<compile_context>
chip_gen: v6e
topology: v6e:2x2x1
jax: 0.10.0
libtpu: 0.0.40
codegen_flags: <defaults>
</compile_context>

<pallas_src>
import jax
import jax.numpy as jnp
from jax.experimental import pallas as pl
from jax.experimental.pallas import tpu as pltpu


def _round_up(x, m):
    return ((x + m - 1) // m) * m


def mlp_kernel(x_ref, w1_ref, b1_ref, w2_ref, b2_ref,
               w3_ref, b3_ref, w4_ref, b4_ref, o_ref):
    """Fused 4-layer MLP on one batch tile (weights stay VMEM-resident)."""
    cd = w1_ref.dtype  # MXU operand dtype (bf16 by default)
    # fc1 + relu      (dropout -> identity in eval mode)
    h = jnp.dot(x_ref[...], w1_ref[...], preferred_element_type=jnp.float32)
    h = jnp.maximum(h + b1_ref[...], 0.0)
    # fc2 + relu      (dropout -> identity in eval mode)
    h = jnp.dot(h.astype(cd), w2_ref[...], preferred_element_type=jnp.float32)
    h = jnp.maximum(h + b2_ref[...], 0.0)
    # fc3 + relu      (dropout -> identity in eval mode)
    h = jnp.dot(h.astype(cd), w3_ref[...], preferred_element_type=jnp.float32)
    h = jnp.maximum(h + b3_ref[...], 0.0)
    # fc4 (no activation); output lanes zero-padded to 128 in the wrapper
    o = jnp.dot(h.astype(cd), w4_ref[...], preferred_element_type=jnp.float32)
    o_ref[...] = (o + b4_ref[...]).astype(o_ref.dtype)


def mlp_forward(x, params, *, compute_dtype=jnp.bfloat16, max_tile_b=256):
    """Run the fused MLP with a batch-tiled Pallas grid."""
    B, in_dim = x.shape
    out_dim = params["w4"].shape[1]

    # --- batch tiling: MXU-filling tiles, pipelined x/out DMAs -------------
    tile_b = min(max_tile_b, _round_up(B, 8))
    b_pad = _round_up(B, tile_b)
    if b_pad != B:
        x = jnp.pad(x, ((0, b_pad - B), (0, 0)))

    # --- lane-dense output: pad fc4 output features to a multiple of 128 ---
    out_pad = _round_up(out_dim, 128)
    w4 = jnp.pad(params["w4"], ((0, 0), (0, out_pad - out_dim)))
    b4 = jnp.pad(params["b4"], ((0, 0), (0, out_pad - out_dim)))

    # --- bf16 MXU operands; biases / elementwise stay f32 -------------------
    xc = x.astype(compute_dtype)
    w1 = params["w1"].astype(compute_dtype)
    w2 = params["w2"].astype(compute_dtype)
    w3 = params["w3"].astype(compute_dtype)
    w4 = w4.astype(compute_dtype)
    b1 = params["b1"].astype(jnp.float32)
    b2 = params["b2"].astype(jnp.float32)
    b3 = params["b3"].astype(jnp.float32)
    b4 = b4.astype(jnp.float32)

    d0, d1 = w1.shape
    d2 = w2.shape[1]
    d3 = w3.shape[1]
    grid = (b_pad // tile_b,)

    def replicated(shape):
        # whole array every grid step -> kept VMEM-resident by the pipeline
        return pl.BlockSpec(shape, lambda i: (0, 0))

    flops = 2 * b_pad * (d0 * d1 + d1 * d2 + d2 * d3 + d3 * out_pad)
    bytes_accessed = (
        xc.size * xc.dtype.itemsize
        + sum(a.size * a.dtype.itemsize
              for a in (w1, b1, w2, b2, w3, b3, w4, b4))
        + b_pad * out_pad * 4)

    out = pl.pallas_call(
        mlp_kernel,
        out_shape=jax.ShapeDtypeStruct((b_pad, out_pad), jnp.float32),
        grid=grid,
        in_specs=[
            pl.BlockSpec((tile_b, d0), lambda i: (i, 0)),
            replicated(w1.shape), replicated(b1.shape),
            replicated(w2.shape), replicated(b2.shape),
            replicated(w3.shape), replicated(b3.shape),
            replicated(w4.shape), replicated(b4.shape),
        ],
        out_specs=pl.BlockSpec((tile_b, out_pad), lambda i: (i, 0)),
        compiler_params=pltpu.CompilerParams(
            dimension_semantics=("parallel",)),
        cost_estimate=pl.CostEstimate(
            flops=flops, transcendentals=0, bytes_accessed=bytes_accessed),
    )(xc, w1, b1, w2, b2, w3, b3, w4, b4)

    # strip batch padding and the lane padding on the final layer
    return out[:B, :out_dim]


def init_params(key, input_dim, output_dim, hidden_dim):
    """Deterministic init mimicking PyTorch nn.Linear default (U[±1/sqrt(fan_in)]).

    Weights are stored as [in_features, out_features] (transpose of PyTorch's
    layout) so the kernel computes x @ W + b; biases are [1, out] for TPU layout.
    """
    dims = [(input_dim, hidden_dim),
            (hidden_dim, hidden_dim // 2),
            (hidden_dim // 2, hidden_dim // 8),
            (hidden_dim // 8, output_dim)]
    params = {}
    for idx, (fan_in, fan_out) in enumerate(dims, start=1):
        key, kw, kb = jax.random.split(key, 3)
        bound = 1.0 / float(fan_in) ** 0.5
        params[f"w{idx}"] = jax.random.uniform(
            kw, (fan_in, fan_out), jnp.float32, -bound, bound)
        params[f"b{idx}"] = jax.random.uniform(
            kb, (1, fan_out), jnp.float32, -bound, bound)
    return params


def reference_forward(x, params, compute_dtype=jnp.bfloat16):
    """Pure-JAX reference with the same operand dtypes as the kernel."""
    cd = compute_dtype
    h = jnp.dot(x.astype(cd), params["w1"].astype(cd),
                preferred_element_type=jnp.float32)
    h = jnp.maximum(h + params["b1"], 0.0)
    h = jnp.dot(h.astype(cd), params["w2"].astype(cd),
                preferred_element_type=jnp.float32)
    h = jnp.maximum(h + params["b2"], 0.0)
    h = jnp.dot(h.astype(cd), params["w3"].astype(cd),
                preferred_element_type=jnp.float32)
    h = jnp.maximum(h + params["b3"], 0.0)
    return jnp.dot(h.astype(cd), params["w4"].astype(cd),
                   preferred_element_type=jnp.float32) + params["b4"]


if __name__ == "__main__":
    # Small shapes consistent with the module: batch=16, input_dim=32,
    # hidden_dim=64 (so fc2->32, fc3->8), output_dim=4.
    batch, input_dim, hidden_dim, output_dim = 16, 32, 64, 4

    key = jax.random.PRNGKey(0)
    key, kx = jax.random.split(key)
    x = jax.random.normal(kx, (batch, input_dim), jnp.float32)
    params = init_params(key, input_dim, output_dim, hidden_dim)

    out = jax.block_until_ready(mlp_forward(x, params))
    assert out.shape == (batch, output_dim)

    # Match against a reference using the same bf16-operand / f32-accum recipe.
    ref = reference_forward(x, params, compute_dtype=jnp.bfloat16)
    assert jnp.allclose(out, ref, atol=1e-3, rtol=1e-3), "mismatch vs bf16 reference"

    # Sanity check against the full-f32 reference (looser tol for bf16 operands).
    ref32 = reference_forward(x, params, compute_dtype=jnp.float32)
    assert jnp.allclose(out, ref32, atol=1e-1, rtol=1e-1), "mismatch vs f32 reference"

    print("KERNEL_OK")
</pallas_src>

<mosaic_0001>
module attributes {stable_mosaic.version = 11 : i64} {
  func.func @mlp_kernel(%arg0: i32, %arg1: memref<16x32xbf16, #tpu.memory_space<vmem>>, %arg2: memref<32x64xbf16, #tpu.memory_space<vmem>>, %arg3: memref<1x64xf32, #tpu.memory_space<vmem>>, %arg4: memref<64x32xbf16, #tpu.memory_space<vmem>>, %arg5: memref<1x32xf32, #tpu.memory_space<vmem>>, %arg6: memref<32x8xbf16, #tpu.memory_space<vmem>>, %arg7: memref<1x8xf32, #tpu.memory_space<vmem>>, %arg8: memref<8x128xbf16, #tpu.memory_space<vmem>>, %arg9: memref<1x128xf32, #tpu.memory_space<vmem>>, %arg10: memref<16x128xf32, #tpu.memory_space<vmem>>) attributes {dimension_semantics = [#tpu.dimension_semantics<parallel>], iteration_bounds = array<i64: 1>, scalar_prefetch = 0 : i64, scratch_operands = 0 : i64, tpu.core_type = #tpu.core_type<tc>, window_params = [{transform_indices = @transform_0, window_bounds = array<i64: 16, 32>}, {pipeline_mode = #tpu.pipeline_mode<synchronous>, transform_indices = @transform_1, window_bounds = array<i64: 32, 64>}, {pipeline_mode = #tpu.pipeline_mode<synchronous>, transform_indices = @transform_2, window_bounds = array<i64: 1, 64>}, {pipeline_mode = #tpu.pipeline_mode<synchronous>, transform_indices = @transform_3, window_bounds = array<i64: 64, 32>}, {pipeline_mode = #tpu.pipeline_mode<synchronous>, transform_indices = @transform_4, window_bounds = array<i64: 1, 32>}, {pipeline_mode = #tpu.pipeline_mode<synchronous>, transform_indices = @transform_5, window_bounds = array<i64: 32, 8>}, {pipeline_mode = #tpu.pipeline_mode<synchronous>, transform_indices = @transform_6, window_bounds = array<i64: 1, 8>}, {pipeline_mode = #tpu.pipeline_mode<synchronous>, transform_indices = @transform_7, window_bounds = array<i64: 8, 128>}, {pipeline_mode = #tpu.pipeline_mode<synchronous>, transform_indices = @transform_8, window_bounds = array<i64: 1, 128>}, {transform_indices = @transform_9, window_bounds = array<i64: 16, 128>}]} {
    %c0 = arith.constant 0 : index
    %c0_0 = arith.constant 0 : index
    %0 = vector.load %arg1[%c0, %c0_0] : memref<16x32xbf16, #tpu.memory_space<vmem>>, vector<16x32xbf16>
    %c0_1 = arith.constant 0 : index
    %c0_2 = arith.constant 0 : index
    %1 = vector.load %arg2[%c0_1, %c0_2] : memref<32x64xbf16, #tpu.memory_space<vmem>>, vector<32x64xbf16>
    %cst = arith.constant dense<0.000000e+00> : vector<16x64xf32>
    %2 = tpu.matmul %0, %1, %cst {dimension_numbers = #tpu.dot_dimension_numbers<[1], [0], [0], [1], [0, 0, 1, 1], [], []>} : vector<16x32xbf16>, vector<32x64xbf16>, vector<16x64xf32> -> vector<16x64xf32>
    %c0_3 = arith.constant 0 : index
    %c0_4 = arith.constant 0 : index
    %3 = vector.load %arg3[%c0_3, %c0_4] : memref<1x64xf32, #tpu.memory_space<vmem>>, vector<1x64xf32>
    %4 = vector.broadcast %3 : vector<1x64xf32> to vector<16x64xf32>
    %5 = arith.addf %2, %4 : vector<16x64xf32>
    %cst_5 = arith.constant 0.000000e+00 : f32
    %6 = vector.broadcast %cst_5 : f32 to vector<16x64xf32>
    %7 = arith.maximumf %5, %6 : vector<16x64xf32>
    %8 = arith.truncf %7 : vector<16x64xf32> to vector<16x64xbf16>
    %c0_6 = arith.constant 0 : index
    %c0_7 = arith.constant 0 : index
    %9 = vector.load %arg4[%c0_6, %c0_7] : memref<64x32xbf16, #tpu.memory_space<vmem>>, vector<64x32xbf16>
    %cst_8 = arith.constant dense<0.000000e+00> : vector<16x32xf32>
    %10 = tpu.matmul %8, %9, %cst_8 {dimension_numbers = #tpu.dot_dimension_numbers<[1], [0], [0], [1], [0, 0, 1, 1], [], []>} : vector<16x64xbf16>, vector<64x32xbf16>, vector<16x32xf32> -> vector<16x32xf32>
    %c0_9 = arith.constant 0 : index
    %c0_10 = arith.constant 0 : index
    %11 = vector.load %arg5[%c0_9, %c0_10] : memref<1x32xf32, #tpu.memory_space<vmem>>, vector<1x32xf32>
    %12 = vector.broadcast %11 : vector<1x32xf32> to vector<16x32xf32>
    %13 = arith.addf %10, %12 : vector<16x32xf32>
    %cst_11 = arith.constant 0.000000e+00 : f32
    %14 = vector.broadcast %cst_11 : f32 to vector<16x32xf32>
    %15 = arith.maximumf %13, %14 : vector<16x32xf32>
    %16 = arith.truncf %15 : vector<16x32xf32> to vector<16x32xbf16>
    %c0_12 = arith.constant 0 : index
    %c0_13 = arith.constant 0 : index
    %17 = vector.load %arg6[%c0_12, %c0_13] : memref<32x8xbf16, #tpu.memory_space<vmem>>, vector<32x8xbf16>
    %cst_14 = arith.constant dense<0.000000e+00> : vector<16x8xf32>
    %18 = tpu.matmul %16, %17, %cst_14 {dimension_numbers = #tpu.dot_dimension_numbers<[1], [0], [0], [1], [0, 0, 1, 1], [], []>} : vector<16x32xbf16>, vector<32x8xbf16>, vector<16x8xf32> -> vector<16x8xf32>
    %c0_15 = arith.constant 0 : index
    %c0_16 = arith.constant 0 : index
    %19 = vector.load %arg7[%c0_15, %c0_16] : memref<1x8xf32, #tpu.memory_space<vmem>>, vector<1x8xf32>
    %20 = vector.broadcast %19 : vector<1x8xf32> to vector<16x8xf32>
    %21 = arith.addf %18, %20 : vector<16x8xf32>
    %cst_17 = arith.constant 0.000000e+00 : f32
    %22 = vector.broadcast %cst_17 : f32 to vector<16x8xf32>
    %23 = arith.maximumf %21, %22 : vector<16x8xf32>
    %24 = arith.truncf %23 : vector<16x8xf32> to vector<16x8xbf16>
    %c0_18 = arith.constant 0 : index
    %c0_19 = arith.constant 0 : index
    %25 = vector.load %arg8[%c0_18, %c0_19] : memref<8x128xbf16, #tpu.memory_space<vmem>>, vector<8x128xbf16>
    %cst_20 = arith.constant dense<0.000000e+00> : vector<16x128xf32>
    %26 = tpu.matmul %24, %25, %cst_20 {dimension_numbers = #tpu.dot_dimension_numbers<[1], [0], [0], [1], [0, 0, 1, 1], [], []>} : vector<16x8xbf16>, vector<8x128xbf16>, vector<16x128xf32> -> vector<16x128xf32>
    %c0_21 = arith.constant 0 : index
    %c0_22 = arith.constant 0 : index
    %27 = vector.load %arg9[%c0_21, %c0_22] : memref<1x128xf32, #tpu.memory_space<vmem>>, vector<1x128xf32>
    %28 = vector.broadcast %27 : vector<1x128xf32> to vector<16x128xf32>
    %29 = arith.addf %26, %28 : vector<16x128xf32>
    %c0_23 = arith.constant 0 : index
    %c0_24 = arith.constant 0 : index
    %30 = vector.load %arg10[%c0_23, %c0_24] : memref<16x128xf32, #tpu.memory_space<vmem>>, vector<16x128xf32>
    tpu.vector_store %arg10[%c0_23, %c0_24], %29 {strides = array<i32>} : memref<16x128xf32, #tpu.memory_space<vmem>>, vector<16x128xf32>,
    return
  }
  func.func @transform_0(%arg0: i32) -> (i32, i32) {
    %c0_i32 = arith.constant 0 : i32
    %c0_i32_0 = arith.constant 0 : i32
    return %arg0, %c0_i32 : i32, i32
  }
  func.func @transform_1(%arg0: i32) -> (i32, i32) {
    %c0_i32 = arith.constant 0 : i32
    %c0_i32_0 = arith.constant 0 : i32
    %c0_i32_1 = arith.constant 0 : i32
    return %c0_i32, %c0_i32_0 : i32, i32
  }
  func.func @transform_2(%arg0: i32) -> (i32, i32) {
    %c0_i32 = arith.constant 0 : i32
    %c0_i32_0 = arith.constant 0 : i32
    %c0_i32_1 = arith.constant 0 : i32
    return %c0_i32, %c0_i32_0 : i32, i32
  }
  func.func @transform_3(%arg0: i32) -> (i32, i32) {
    %c0_i32 = arith.constant 0 : i32
    %c0_i32_0 = arith.constant 0 : i32
    %c0_i32_1 = arith.constant 0 : i32
    return %c0_i32, %c0_i32_0 : i32, i32
  }
  func.func @transform_4(%arg0: i32) -> (i32, i32) {
    %c0_i32 = arith.constant 0 : i32
    %c0_i32_0 = arith.constant 0 : i32
    %c0_i32_1 = arith.constant 0 : i32
    return %c0_i32, %c0_i32_0 : i32, i32
  }
  func.func @transform_5(%arg0: i32) -> (i32, i32) {
    %c0_i32 = arith.constant 0 : i32
    %c0_i32_0 = arith.constant 0 : i32
    %c0_i32_1 = arith.constant 0 : i32
    return %c0_i32, %c0_i32_0 : i32, i32
  }
  func.func @transform_6(%arg0: i32) -> (i32, i32) {
    %c0_i32 = arith.constant 0 : i32
    %c0_i32_0 = arith.constant 0 : i32
    %c0_i32_1 = arith.constant 0 : i32
    return %c0_i32, %c0_i32_0 : i32, i32
  }
  func.func @transform_7(%arg0: i32) -> (i32, i32) {
    %c0_i32 = arith.constant 0 : i32
    %c0_i32_0 = arith.constant 0 : i32
    %c0_i32_1 = arith.constant 0 : i32
    return %c0_i32, %c0_i32_0 : i32, i32
  }
  func.func @transform_8(%arg0: i32) -> (i32, i32) {
    %c0_i32 = arith.constant 0 : i32
    %c0_i32_0 = arith.constant 0 : i32
    %c0_i32_1 = arith.constant 0 : i32
    return %c0_i32, %c0_i32_0 : i32, i32
  }
  func.func @transform_9(%arg0: i32) -> (i32, i32) {
    %c0_i32 = arith.constant 0 : i32
    %c0_i32_0 = arith.constant 0 : i32
    return %arg0, %c0_i32 : i32, i32
  }
}

</mosaic_0001>

<bundles_post_ra>
// kernel: tpu_custom_call.1
= control target key start
LH: loop header
LB: loop body
LE: loop exit
PB: predicated region body
PF: predicated region fallthrough
CT: control target
= control target key end

     0   :  { %v444_v1 = vmov 0.0   ;;  %vm445_vm0 = vmmov 0   ;;  %vm64_vm1 = vcmask 261120   ;;  %s550_s0 = inlined_call_operand.vmem [shape: bf16[16,32], index: 0, kind: input, shape index: {}]   ;;  %s551_s1 = inlined_call_operand.vmem [shape: bf16[32,64], index: 1, kind: input, shape index: {}]   ;;  %s552_s2 = inlined_call_operand.vmem [shape: f32[1,64], index: 2, kind: input, shape index: {}]   ;;  %s553_s3 = inlined_call_operand.vmem [shape: bf16[64,32], index: 3, kind: input, shape index: {}]   ;;  %s554_s4 = inlined_call_operand.vmem [shape: f32[1,32], index: 4, kind: input, shape index: {}]   ;;  %s555_s5 = inlined_call_operand.vmem [shape: bf16[32,8], index: 5, kind: input, shape index: {}]   ;;  %s556_s6 = inlined_call_operand.vmem [shape: f32[1,8], index: 6, kind: input, shape index: {}]   ;;  %s557_s7 = inlined_call_operand.vmem [shape: bf16[8,128], index: 7, kind: input, shape index: {}]   ;;  %s558_s8 = inlined_call_operand.vmem [shape: f32[1,128], index: 8, kind: input, shape index: {}]   ;;  %s559_s9 = inlined_call_operand.hbm [shape: f32[16,128], index: 9, kind: output, shape index: {}]  }
   0x1   :  { %v413_v0 = vld [vmem:[%s551_s1 + $0x8] sm:$0xff]   ;;  %374 = vmatprep.subr.bf16.mxu0 %v444_v1  ;;  %382 = vmatprep.subr.bf16.mxu1 %v444_v1  ;;  %v414_v2 = vld [vmem:[%s551_s1] sm:$0xff]   ;;  %v416_v3 = vld [vmem:[%s553_s3 + $0x18] sm:$0xff]  }
   0x2   :  { %375 = vmatpush3.bf16.msra.mxu0 %v413_v0  ;;  %378 = vmatprep.mubr.msk.bf16.mxu0 %vm445_vm0, %v444_v1  ;;  %v415_v4 = vld [vmem:[%s550_s0] sm:$0xff]  }
   0x3   :  { %376 = vmatprep.subr.bf16.mxu0 %v444_v1  ;;  %390 = vmatprep.mubr.msk.bf16.mxu1 %vm445_vm0, %v444_v1 }
   0x4   :  { %383 = vmatpush3.bf16.msra.mxu1 %v416_v3 }
   0x5   :  { %384 = vmatprep.subr.bf16.mxu1 %v444_v1 }
   0x6   :  { %377 = vmatpush3.bf16.msra.mxu0 %v414_v2 }
   0x7   :  { %394 = vmatprep.subr.bf16.mxu0 %v444_v1 }
   0x8   :  { %14 = vsyncpa [#allocation3], 0  ;;  %v417_v5 = vld [vmem:[%s553_s3 + $0x10] sm:$0xff]   ;;  %v418_v6 = vld [vmem:[%s553_s3 + $0x8] sm:$0xff]   ;;  %vm151_vm2 = vcmask 523264   ;;  %vm281_vm3 = vcmask 1043456  }
   0x9   :  { %379 = vmatmul.mubr.msk.bf16.vlgmr.msra.gmra.mxu0 %vm64_vm1, %v415_v4  ;;  %385 = vmatpush3.bf16.msra.mxu1 %v417_v5  ;;  %v419_v7 = vld [vmem:[%s553_s3] sm:$0xff]   ;;  %v420_v18 = vld [vmem:[%s555_s5 + $0x8] sm:$0xff]   ;;  %vm277_vm4 = vcmask 64512   ;;  %s446_s30 = smov [#allocation2]  }
   0xa   :  { %398 = vmatprep.mubr.msk.bf16.mxu0 %vm445_vm0, %v444_v1  ;;  %386 = vmatprep.subr.bf16.mxu1 %v444_v1  ;;  %v344_v8 = vld [vmem:[%s552_s2] ss:$0 sm:$0xff]  ;;  %s333_s10 = sshll.u32 %s446_s30, 4  ;;  %s334_s10 = int_to_ptr.vmem [resolvable:$true] %s333_s10 }
   0xb   :  { %395 = vmatpush3.bf16.msra.mxu0 %v420_v18  ;;  %v421_v19 = vld [vmem:[%s555_s5] sm:$0xff]   ;;  %p427_p1 = scmp.lt.s32.totalorder %s334_s10, %s334_s10 }
   0xc   :  { %396 = vmatprep.subr.bf16.mxu0 %v444_v1  ;;  %v349_v20 = vld [vmem:[%s554_s4] ss:$0 sm:$0xff] }
   0xd   :  { %387 = vmatpush3.bf16.msra.mxu1 %v418_v6  ;;  %v269_v30 = vld [vmem:[%s557_s7] sm:$0xf] }
   0xe   :  { %388 = vmatprep.subr.bf16.mxu1 %v444_v1  ;;  %v283_v31 = vsel %vm281_vm3, %v269_v30, 0  ;;  %v355_v32 = vld [vmem:[%s556_s6] ss:$0 sm:$0xff]  ;;  %s422_s6 = scalar_lea.vmem %s334_s10, 256 }
   0xf   :  { %397 = vmatpush3.bf16.msra.mxu0 %v421_v19  ;;  %v359_v42 = vld [vmem:[%s558_s8] ss:$0 sm:$0xff]  ;;  %p423_p0 = scmp.ne.s32.totalorder %s334_s10, %s422_s6  ;;  %p428_p2 = scmp.lt.s32.totalorder %s422_s6, %s422_s6 }
  0x10   :  { %402 = vmatprep.subr.bf16.mxu0 %v444_v1 }
  0x11   :  { %389 = vmatpush3.bf16.msra.mxu1 %v419_v7  ;;  %p429_p3 = por %p428_p2, %p427_p1 }
  0x13   :  { %p430_p4 = pnand %p429_p3, %p423_p0 }
  0xc9   :  { %v102_v9 = vpop.f32.mrf.mxu0 }
  0xca   :  { %v103_v11 = vadd.f32 %v344_v8, %v102_v9 }
  0xcb   :  { %v380_v10 = vpop.f32.mrf.mxu0 }
  0xcc   :  { %v109_v15 = vmax.f32 %v103_v11, 0.0 }
  0xcd   :  { %v105_v12 = vpop.f32.mrf.mxu0 }
  0xce   :  { %v106_v13 = vadd.f32 %v344_v8, %v105_v12 }
  0xcf   :  { %v381_v14 = vpop.f32.mrf.mxu0 }
  0xd0   :  { %v110_v16 = vmax.f32 %v106_v13, 0.0 }
  0xd2   :  { %v111_v17 = vpack.c.bf16 %v110_v16, %v109_v15 }
  0xd4   :  { %391 = vmatmul.mubr.msk.bf16.vlgmr.msra.gmra.mxu1 %vm151_vm2, %v111_v17 }
 0x194   :  { %v189_v21 = vpop.f32.mrf.mxu1 }
 0x195   :  { %v190_v23 = vadd.f32 %v349_v20, %v189_v21 }
 0x196   :  { %v392_v22 = vpop.f32.mrf.mxu1 }
 0x197   :  { %v196_v27 = vmax.f32 %v190_v23, 0.0 }
 0x198   :  { %v192_v24 = vpop.f32.mrf.mxu1 }
 0x199   :  { %v193_v25 = vadd.f32 %v349_v20, %v192_v24 }
 0x19a   :  { %v393_v26 = vpop.f32.mrf.mxu1 }
 0x19b   :  { %v197_v28 = vmax.f32 %v193_v25, 0.0 }
 0x19d   :  { %v198_v29 = vpack.c.bf16 %v197_v28, %v196_v27 }
 0x19f   :  { %399 = vmatmul.mubr.msk.bf16.vlgmr.msra.gmra.mxu0 %vm64_vm1, %v198_v29 }
 0x1a0   :  { %404 = vmatprep.mubr.msk.bf16.mxu0 %vm445_vm0, %v444_v1  ;;  %403 = vmatpush3.bf16.msra.mxu0 %v283_v31 }
 0x25f   :  { %v259_v33 = vpop.f32.mrf.mxu0 }
 0x260   :  { %v260_v35 = vadd.f32 %v355_v32, %v259_v33 }
 0x261   :  { %v400_v34 = vpop.f32.mrf.mxu0 }
 0x262   :  { %v266_v39 = vmax.f32 %v260_v35, 0.0 }
 0x263   :  { %v262_v36 = vpop.f32.mrf.mxu0 }
 0x264   :  { %v263_v37 = vadd.f32 %v355_v32, %v262_v36 }
 0x265   :  { %v401_v38 = vpop.f32.mrf.mxu0 }
 0x266   :  { %v267_v40 = vmax.f32 %v263_v37, 0.0 }
 0x268   :  { %v268_v41 = vpack.c.bf16 %v267_v40, %v266_v39 }
 0x26a   :  { %405 = vmatmul.mubr.msk.bf16.vlgmr.msra.gmra.mxu0 %vm277_vm4, %v268_v41 }
 0x32a   :  { %v319_v43 = vpop.f32.mrf.mxu0 }
 0x32b   :  { %v320_v44 = vadd.f32 %v359_v42, %v319_v43 }
 0x32c   :  { %v406_v45 = vpop.f32.mrf.mxu0 }
 0x32d   :  { %326 = vst [vmem:[#allocation2] sm:$0xff] %v320_v44 }
 0x32e   :  { %v322_v46 = vpop.f32.mrf.mxu0 }
 0x32f   :  { %v323_v47 = vadd.f32 %v359_v42, %v322_v46 }
 0x330   :  { %v407_v48 = vpop.f32.mrf.mxu0 }
 0x331   :  { %327 = vst [vmem:[#allocation2 + $0x8] sm:$0xff] %v323_v47 }
 0x332   :  { %433 = shalt.err (!%p430_p4)
}
 0x333   :  { %s447_s11 = smov 128   ;;  %s448_s8 = smov 8  }
 0x334   :  { %339 = dma.vmem_to_hbm [thread:$0]  %s334_s10, 256, %s559_s9, [#allocation3], %s447_s11, %s447_s11, %s448_s8  }
 0x335   :  { %442 = dma.done.wait [#allocation3], 256  }
 0x336   :  { %443 = vsyncadd [#allocation3], 4294967040 }
 0x337   :  { %343 = vsyncpa [#allocation3], 1 }

</bundles_post_ra>
